<compile_context>
chip_gen: v5e
topology: v5e:2x2
jax: 0.10.0
libtpu: 0.0.40
codegen_flags: <defaults>
</compile_context>

<pallas_src>
import jax
import jax.numpy as jnp
from jax.experimental import pallas as pl
from jax.experimental.pallas import tpu as pltpu

LANE = 128


def _round_up(x, m):
    return (x + m - 1) // m * m


def _align(dim):
    # v6e/v7x MXU is 2x256^2: prefer 256-aligned widths when the layer is
    # already >= 256 wide; otherwise 128-lane padding (don't grow tiny layers
    # with pure zero-work; 128 already matches v5e's 4x128^2 MXU).
    return _round_up(dim, 256) if dim >= 256 else _round_up(dim, LANE)


def _pad2d(a, shape):
    return jnp.pad(a, [(0, s - d) for d, s in zip(a.shape, shape)])


def mlp_kernel(x_ref,
               w1_ref, b1_ref,
               w2_ref, b2_ref,
               w3_ref, b3_ref,
               w4_ref, b4_ref,
               o_ref):
    # Whole 4-layer MLP hot path for one batch tile.
    # bf16 operands on the MXU, f32 accumulation, f32 bias-add/tanh (VPU/EUP).
    x = x_ref[...]                                                    # bf16 (tile, Fp)
    h = jnp.dot(x, w1_ref[...], preferred_element_type=jnp.float32) + b1_ref[...]
    h = jnp.tanh(h).astype(jnp.bfloat16)
    h = jnp.dot(h, w2_ref[...], preferred_element_type=jnp.float32) + b2_ref[...]
    h = jnp.tanh(h).astype(jnp.bfloat16)
    h = jnp.dot(h, w3_ref[...], preferred_element_type=jnp.float32) + b3_ref[...]
    h = jnp.tanh(h).astype(jnp.bfloat16)
    y = jnp.dot(h, w4_ref[...], preferred_element_type=jnp.float32) + b4_ref[...]
    o_ref[...] = y.astype(o_ref.dtype)                                # lane-dense store


def prepare_params(params):
    """Pad weights/biases to lane-dense widths and cast once (not per call)."""
    n_feature, n_hidden = params["w1"].shape
    n_output = params["w4"].shape[1]
    Fp, Hp, Op = _align(n_feature), _align(n_hidden), _align(n_output)
    w_shapes = [(Fp, Hp), (Hp, Hp), (Hp, Hp), (Hp, Op)]
    weights, biases = [], []
    for idx, (rp, cp) in enumerate(w_shapes, start=1):
        weights.append(_pad2d(params[f"w{idx}"], (rp, cp)).astype(jnp.bfloat16))
        biases.append(_pad2d(params[f"b{idx}"], (1, cp)).astype(jnp.float32))
    meta = dict(n_feature=n_feature, n_hidden=n_hidden, n_output=n_output,
                Fp=Fp, Hp=Hp, Op=Op)
    return tuple(weights), tuple(biases), meta


def _pick_batch_tile(B, requested):
    # Clamp padding to the real batch (16 = bf16 sublane pack).
    bt = min(requested, _round_up(B, 16))
    # v7x megacore: prefer >= 2 grid steps when the batch supports >=128-row tiles.
    if _round_up(B, bt) // bt < 2 and B >= 2 * LANE:
        bt = max(LANE, _round_up((B + 1) // 2, 16))
    return bt


def _pallas_mlp(x_p, weights, biases, *, batch_tile, out_cols, out_dtype,
                vmem_limit_bytes):
    Bp, Fp = x_p.shape

    resident = lambda i: (0, 0)   # weights / biases: same block every grid step
    tiled = lambda i: (i, 0)      # x / y: tiled along the batch axis

    in_specs = [pl.BlockSpec((batch_tile, Fp), tiled)]
    args = [x_p]
    for w, b in zip(weights, biases):
        in_specs.append(pl.BlockSpec(w.shape, resident))
        in_specs.append(pl.BlockSpec(b.shape, resident))
        args += [w, b]

    return pl.pallas_call(
        mlp_kernel,
        out_shape=jax.ShapeDtypeStruct((Bp, out_cols), out_dtype),
        grid_spec=pltpu.PrefetchScalarGridSpec(
            num_scalar_prefetch=0,
            grid=(Bp // batch_tile,),
            in_specs=in_specs,
            out_specs=pl.BlockSpec((batch_tile, out_cols), tiled),
        ),
        compiler_params=pltpu.CompilerParams(
            dimension_semantics=("parallel",),     # megacore-shard batch tiles
            vmem_limit_bytes=vmem_limit_bytes,
        ),
    )(*args)


def net_forward(x, prepared, *, batch_tile=256, out_dtype=jnp.float32):
    """x: (B, n_feature) f32.  prepared: output of prepare_params(params)."""
    weights, biases, meta = prepared
    B, n_feature = x.shape
    assert n_feature == meta["n_feature"]
    Fp, Hp, Op = meta["Fp"], meta["Hp"], meta["Op"]

    bt = _pick_batch_tile(B, batch_tile)
    Bp = _round_up(B, bt)
    x_p = _pad2d(x, (Bp, Fp)).astype(jnp.bfloat16)

    # Explicit VMEM budget:
    #   default pipelining double-buffers every block -> 2x resident params,
    #   2x streamed bf16 x tiles, 2x streamed output tiles,
    #   plus headroom for the f32 intermediates live across the next matmul.
    param_bytes = sum(a.size * a.dtype.itemsize for a in weights + biases)
    out_itemsize = jnp.dtype(out_dtype).itemsize
    stream_bytes = 2 * bt * Fp * 2 + 2 * bt * Op * out_itemsize
    interm_bytes = 3 * bt * Hp * 4
    vmem_bytes = 2 * param_bytes + stream_bytes + interm_bytes
    # Keep under ~48 MiB so the same config also fits v7x's 64 MiB physical
    # VMEM.  TODO(synk): for n_hidden >= ~2048, K-tile the hidden dimension
    # (extra grid axis + f32 accumulator) instead of keeping all weights resident.
    assert vmem_bytes < 48 * 1024 * 1024, (
        f"estimated VMEM footprint {vmem_bytes} B too large; reduce batch_tile "
        "or K-tile the hidden dimension")
    vmem_limit = int(min(max(int(vmem_bytes * 1.25), 8 << 20), 56 << 20))

    y_p = _pallas_mlp(x_p, weights, biases, batch_tile=bt, out_cols=Op,
                      out_dtype=out_dtype, vmem_limit_bytes=vmem_limit)
    return y_p[:B, :meta["n_output"]]


def init_params(key, n_feature, n_hidden, n_output):
    """Mimics torch.nn.Linear uniform(-1/sqrt(fan_in), 1/sqrt(fan_in)) init.
    Weights stored as (in_features, out_features)."""
    keys = jax.random.split(key, 8)
    dims = [(n_feature, n_hidden), (n_hidden, n_hidden),
            (n_hidden, n_hidden), (n_hidden, n_output)]
    params = {}
    for idx, (fan_in, fan_out) in enumerate(dims, start=1):
        bound = 1.0 / jnp.sqrt(float(fan_in))
        params[f"w{idx}"] = jax.random.uniform(
            keys[2 * (idx - 1)], (fan_in, fan_out), jnp.float32, -bound, bound)
        params[f"b{idx}"] = jax.random.uniform(
            keys[2 * (idx - 1) + 1], (1, fan_out), jnp.float32, -bound, bound)
    return params


def net_forward_ref_f32(x, params):
    """Pure-f32 JAX reference (original torch semantics)."""
    h1 = jnp.tanh(x @ params["w1"] + params["b1"])
    h2 = jnp.tanh(h1 @ params["w2"] + params["b2"])
    h3 = jnp.tanh(h2 @ params["w3"] + params["b3"])
    return h3 @ params["w4"] + params["b4"]


def net_forward_ref_bf16(x, params):
    """Reference matching the kernel's precision: bf16 operands, f32 accumulation."""
    def dot16(a, w):
        return jnp.dot(a.astype(jnp.bfloat16), w.astype(jnp.bfloat16),
                       preferred_element_type=jnp.float32)
    h = jnp.tanh(dot16(x, params["w1"]) + params["b1"]).astype(jnp.bfloat16)
    h = jnp.tanh(dot16(h, params["w2"]) + params["b2"]).astype(jnp.bfloat16)
    h = jnp.tanh(dot16(h, params["w3"]) + params["b3"]).astype(jnp.bfloat16)
    return dot16(h, params["w4"]) + params["b4"]


if __name__ == "__main__":
    key = jax.random.PRNGKey(0)
    k_x, k_p = jax.random.split(key)

    B, n_feature, n_hidden, n_output = 16, 16, 32, 4
    x = jax.random.normal(k_x, (B, n_feature), jnp.float32)
    params = init_params(k_p, n_feature, n_hidden, n_output)

    # Pad / cast weights once, outside the per-call path.
    prepared = prepare_params(params)

    y = net_forward(x, prepared)          # batch tile clamps to 16 rows here
    y = jax.block_until_ready(y)
    assert y.shape == (B, n_output)

    # Precision-matched check (bf16 operands, f32 accumulation).
    y_bf16 = net_forward_ref_bf16(x, params)
    assert jnp.allclose(y, y_bf16, atol=5e-3, rtol=5e-3), "mismatch vs bf16 reference"

    # Semantic check vs the original full-f32 torch-equivalent forward.
    y_f32 = net_forward_ref_f32(x, params)
    assert jnp.allclose(y, y_f32, atol=1e-1, rtol=1e-1), "mismatch vs f32 reference"

    print("KERNEL_OK")
</pallas_src>

<mosaic_0001>
module attributes {stable_mosaic.version = 11 : i64} {
  func.func @mlp_kernel(%arg0: i32, %arg1: memref<16x128xbf16, #tpu.memory_space<vmem>>, %arg2: memref<128x128xbf16, #tpu.memory_space<vmem>>, %arg3: memref<1x128xf32, #tpu.memory_space<vmem>>, %arg4: memref<128x128xbf16, #tpu.memory_space<vmem>>, %arg5: memref<1x128xf32, #tpu.memory_space<vmem>>, %arg6: memref<128x128xbf16, #tpu.memory_space<vmem>>, %arg7: memref<1x128xf32, #tpu.memory_space<vmem>>, %arg8: memref<128x128xbf16, #tpu.memory_space<vmem>>, %arg9: memref<1x128xf32, #tpu.memory_space<vmem>>, %arg10: memref<16x128xf32, #tpu.memory_space<vmem>>) attributes {dimension_semantics = [#tpu.dimension_semantics<parallel>], iteration_bounds = array<i64: 1>, scalar_prefetch = 0 : i64, scratch_operands = 0 : i64, tpu.core_type = #tpu.core_type<tc>, window_params = [{transform_indices = @transform_0, window_bounds = array<i64: 16, 128>}, {pipeline_mode = #tpu.pipeline_mode<synchronous>, transform_indices = @transform_1, window_bounds = array<i64: 128, 128>}, {pipeline_mode = #tpu.pipeline_mode<synchronous>, transform_indices = @transform_2, window_bounds = array<i64: 1, 128>}, {pipeline_mode = #tpu.pipeline_mode<synchronous>, transform_indices = @transform_3, window_bounds = array<i64: 128, 128>}, {pipeline_mode = #tpu.pipeline_mode<synchronous>, transform_indices = @transform_4, window_bounds = array<i64: 1, 128>}, {pipeline_mode = #tpu.pipeline_mode<synchronous>, transform_indices = @transform_5, window_bounds = array<i64: 128, 128>}, {pipeline_mode = #tpu.pipeline_mode<synchronous>, transform_indices = @transform_6, window_bounds = array<i64: 1, 128>}, {pipeline_mode = #tpu.pipeline_mode<synchronous>, transform_indices = @transform_7, window_bounds = array<i64: 128, 128>}, {pipeline_mode = #tpu.pipeline_mode<synchronous>, transform_indices = @transform_8, window_bounds = array<i64: 1, 128>}, {transform_indices = @transform_9, window_bounds = array<i64: 16, 128>}]} {
    %c0 = arith.constant 0 : index
    %c0_0 = arith.constant 0 : index
    %0 = vector.load %arg1[%c0, %c0_0] : memref<16x128xbf16, #tpu.memory_space<vmem>>, vector<16x128xbf16>
    %c0_1 = arith.constant 0 : index
    %c0_2 = arith.constant 0 : index
    %1 = vector.load %arg2[%c0_1, %c0_2] : memref<128x128xbf16, #tpu.memory_space<vmem>>, vector<128x128xbf16>
    %cst = arith.constant dense<0.000000e+00> : vector<16x128xf32>
    %2 = tpu.matmul %0, %1, %cst {dimension_numbers = #tpu.dot_dimension_numbers<[1], [0], [0], [1], [0, 0, 1, 1], [], []>} : vector<16x128xbf16>, vector<128x128xbf16>, vector<16x128xf32> -> vector<16x128xf32>
    %c0_3 = arith.constant 0 : index
    %c0_4 = arith.constant 0 : index
    %3 = vector.load %arg3[%c0_3, %c0_4] : memref<1x128xf32, #tpu.memory_space<vmem>>, vector<1x128xf32>
    %4 = vector.broadcast %3 : vector<1x128xf32> to vector<16x128xf32>
    %5 = arith.addf %2, %4 : vector<16x128xf32>
    %6 = math.tanh %5 : vector<16x128xf32>
    %7 = arith.truncf %6 : vector<16x128xf32> to vector<16x128xbf16>
    %c0_5 = arith.constant 0 : index
    %c0_6 = arith.constant 0 : index
    %8 = vector.load %arg4[%c0_5, %c0_6] : memref<128x128xbf16, #tpu.memory_space<vmem>>, vector<128x128xbf16>
    %cst_7 = arith.constant dense<0.000000e+00> : vector<16x128xf32>
    %9 = tpu.matmul %7, %8, %cst_7 {dimension_numbers = #tpu.dot_dimension_numbers<[1], [0], [0], [1], [0, 0, 1, 1], [], []>} : vector<16x128xbf16>, vector<128x128xbf16>, vector<16x128xf32> -> vector<16x128xf32>
    %c0_8 = arith.constant 0 : index
    %c0_9 = arith.constant 0 : index
    %10 = vector.load %arg5[%c0_8, %c0_9] : memref<1x128xf32, #tpu.memory_space<vmem>>, vector<1x128xf32>
    %11 = vector.broadcast %10 : vector<1x128xf32> to vector<16x128xf32>
    %12 = arith.addf %9, %11 : vector<16x128xf32>
    %13 = math.tanh %12 : vector<16x128xf32>
    %14 = arith.truncf %13 : vector<16x128xf32> to vector<16x128xbf16>
    %c0_10 = arith.constant 0 : index
    %c0_11 = arith.constant 0 : index
    %15 = vector.load %arg6[%c0_10, %c0_11] : memref<128x128xbf16, #tpu.memory_space<vmem>>, vector<128x128xbf16>
    %cst_12 = arith.constant dense<0.000000e+00> : vector<16x128xf32>
    %16 = tpu.matmul %14, %15, %cst_12 {dimension_numbers = #tpu.dot_dimension_numbers<[1], [0], [0], [1], [0, 0, 1, 1], [], []>} : vector<16x128xbf16>, vector<128x128xbf16>, vector<16x128xf32> -> vector<16x128xf32>
    %c0_13 = arith.constant 0 : index
    %c0_14 = arith.constant 0 : index
    %17 = vector.load %arg7[%c0_13, %c0_14] : memref<1x128xf32, #tpu.memory_space<vmem>>, vector<1x128xf32>
    %18 = vector.broadcast %17 : vector<1x128xf32> to vector<16x128xf32>
    %19 = arith.addf %16, %18 : vector<16x128xf32>
    %20 = math.tanh %19 : vector<16x128xf32>
    %21 = arith.truncf %20 : vector<16x128xf32> to vector<16x128xbf16>
    %c0_15 = arith.constant 0 : index
    %c0_16 = arith.constant 0 : index
    %22 = vector.load %arg8[%c0_15, %c0_16] : memref<128x128xbf16, #tpu.memory_space<vmem>>, vector<128x128xbf16>
    %cst_17 = arith.constant dense<0.000000e+00> : vector<16x128xf32>
    %23 = tpu.matmul %21, %22, %cst_17 {dimension_numbers = #tpu.dot_dimension_numbers<[1], [0], [0], [1], [0, 0, 1, 1], [], []>} : vector<16x128xbf16>, vector<128x128xbf16>, vector<16x128xf32> -> vector<16x128xf32>
    %c0_18 = arith.constant 0 : index
    %c0_19 = arith.constant 0 : index
    %24 = vector.load %arg9[%c0_18, %c0_19] : memref<1x128xf32, #tpu.memory_space<vmem>>, vector<1x128xf32>
    %25 = vector.broadcast %24 : vector<1x128xf32> to vector<16x128xf32>
    %26 = arith.addf %23, %25 : vector<16x128xf32>
    %c0_20 = arith.constant 0 : index
    %c0_21 = arith.constant 0 : index
    %27 = vector.load %arg10[%c0_20, %c0_21] : memref<16x128xf32, #tpu.memory_space<vmem>>, vector<16x128xf32>
    tpu.vector_store %arg10[%c0_20, %c0_21], %26 {strides = array<i32>} : memref<16x128xf32, #tpu.memory_space<vmem>>, vector<16x128xf32>,
    return
  }
  func.func @transform_0(%arg0: i32) -> (i32, i32) {
    %c0_i32 = arith.constant 0 : i32
    %c0_i32_0 = arith.constant 0 : i32
    return %arg0, %c0_i32 : i32, i32
  }
  func.func @transform_1(%arg0: i32) -> (i32, i32) {
    %c0_i32 = arith.constant 0 : i32
    %c0_i32_0 = arith.constant 0 : i32
    %c0_i32_1 = arith.constant 0 : i32
    return %c0_i32, %c0_i32_0 : i32, i32
  }
  func.func @transform_2(%arg0: i32) -> (i32, i32) {
    %c0_i32 = arith.constant 0 : i32
    %c0_i32_0 = arith.constant 0 : i32
    %c0_i32_1 = arith.constant 0 : i32
    return %c0_i32, %c0_i32_0 : i32, i32
  }
  func.func @transform_3(%arg0: i32) -> (i32, i32) {
    %c0_i32 = arith.constant 0 : i32
    %c0_i32_0 = arith.constant 0 : i32
    %c0_i32_1 = arith.constant 0 : i32
    return %c0_i32, %c0_i32_0 : i32, i32
  }
  func.func @transform_4(%arg0: i32) -> (i32, i32) {
    %c0_i32 = arith.constant 0 : i32
    %c0_i32_0 = arith.constant 0 : i32
    %c0_i32_1 = arith.constant 0 : i32
    return %c0_i32, %c0_i32_0 : i32, i32
  }
  func.func @transform_5(%arg0: i32) -> (i32, i32) {
    %c0_i32 = arith.constant 0 : i32
    %c0_i32_0 = arith.constant 0 : i32
    %c0_i32_1 = arith.constant 0 : i32
    return %c0_i32, %c0_i32_0 : i32, i32
  }
  func.func @transform_6(%arg0: i32) -> (i32, i32) {
    %c0_i32 = arith.constant 0 : i32
    %c0_i32_0 = arith.constant 0 : i32
    %c0_i32_1 = arith.constant 0 : i32
    return %c0_i32, %c0_i32_0 : i32, i32
  }
  func.func @transform_7(%arg0: i32) -> (i32, i32) {
    %c0_i32 = arith.constant 0 : i32
    %c0_i32_0 = arith.constant 0 : i32
    %c0_i32_1 = arith.constant 0 : i32
    return %c0_i32, %c0_i32_0 : i32, i32
  }
  func.func @transform_8(%arg0: i32) -> (i32, i32) {
    %c0_i32 = arith.constant 0 : i32
    %c0_i32_0 = arith.constant 0 : i32
    %c0_i32_1 = arith.constant 0 : i32
    return %c0_i32, %c0_i32_0 : i32, i32
  }
  func.func @transform_9(%arg0: i32) -> (i32, i32) {
    %c0_i32 = arith.constant 0 : i32
    %c0_i32_0 = arith.constant 0 : i32
    return %arg0, %c0_i32 : i32, i32
  }
}

</mosaic_0001>

<bundles_post_ra>
// kernel: tpu_custom_call.1
= control target key start
LH: loop header
LB: loop body
LE: loop exit
PB: predicated region body
PF: predicated region fallthrough
CT: control target
= control target key end

     0   :  { %14 = vsyncpa [#allocation3], 0  ;;  %s912_s0 = inlined_call_operand.hbm [shape: bf16[16,128], index: 0, kind: input, shape index: {}]   ;;  %s913_s1 = inlined_call_operand.hbm [shape: bf16[128,128], index: 1, kind: input, shape index: {}]   ;;  %s914_s2 = inlined_call_operand.vmem [shape: f32[1,128], index: 2, kind: input, shape index: {}]   ;;  %s915_s3 = inlined_call_operand.hbm [shape: bf16[128,128], index: 3, kind: input, shape index: {}]   ;;  %s916_s4 = inlined_call_operand.vmem [shape: f32[1,128], index: 4, kind: input, shape index: {}]   ;;  %s917_s5 = inlined_call_operand.hbm [shape: bf16[128,128], index: 5, kind: input, shape index: {}]   ;;  %s918_s6 = inlined_call_operand.vmem [shape: f32[1,128], index: 6, kind: input, shape index: {}]   ;;  %s919_s7 = inlined_call_operand.hbm [shape: bf16[128,128], index: 7, kind: input, shape index: {}]   ;;  %s920_s8 = inlined_call_operand.vmem [shape: f32[1,128], index: 8, kind: input, shape index: {}]   ;;  %s921_s9 = inlined_call_operand.hbm [shape: f32[16,128], index: 9, kind: output, shape index: {}]  }
   0x1   :  { %15 = vsyncpa [#allocation6], 0 }
   0x2   :  { %16 = vsyncpa [#allocation9], 0 }
   0x3   :  { %17 = vsyncpa [#allocation4], 0  ;;  %s35_s11 = sshll.u32 %s913_s1, 4  ;;  %s822_s12 = smov [#allocation5]   ;;  %s36_s11 = int_to_ptr.hbm [resolvable:$true] %s35_s11 }
   0x4   :  { %s37_s13 = sshll.u32 %s822_s12, 4  ;;  %s65_s16 = sshll.u32 %s917_s5, 4  ;;  %s38_s13 = int_to_ptr.vmem [resolvable:$true] %s37_s13  ;;  %s66_s16 = int_to_ptr.hbm [resolvable:$true] %s65_s16 }
   0x5   :  { %s823_s17 = smov 64   ;;  %s824_s18 = smov 4  }
   0x6   :  { %43 = dma.hbm_to_vmem [thread:$0]  %s36_s11, 1024, %s38_s13, [#allocation6], %s823_s17, %s823_s17, %s824_s18  }
   0x7   :  { %s825_s19 = smov [#allocation8]   ;;  %s22_s23 = sshll.u32 %s912_s0, 4  ;;  %s23_s23 = int_to_ptr.hbm [resolvable:$true] %s22_s23 }
   0x8   :  { %s67_s20 = sshll.u32 %s825_s19, 4  ;;  %s50_s25 = sshll.u32 %s915_s3, 4  ;;  %s68_s20 = int_to_ptr.vmem [resolvable:$true] %s67_s20  ;;  %s51_s25 = int_to_ptr.hbm [resolvable:$true] %s50_s25 }
   0x9   :  { %73 = dma.hbm_to_vmem [thread:$0]  %s66_s16, 1024, %s68_s20, [#allocation9], %s823_s17, %s823_s17, %s824_s18  }
   0xa   :  { %s826_s26 = smov [#allocation2]   ;;  %s827_s5 = smov [#allocation7]  }
   0xb   :  { %s24_s27 = sshll.u32 %s826_s26, 4  ;;  %s52_s28 = sshll.u32 %s827_s5, 4  ;;  %s25_s27 = int_to_ptr.vmem [resolvable:$true] %s24_s27  ;;  %s53_s28 = int_to_ptr.vmem [resolvable:$true] %s52_s28 }
   0xc   :  { %30 = dma.hbm_to_vmem [thread:$0]  %s23_s23, 128, %s25_s27, [#allocation3], %s823_s17, %s823_s17, %s824_s18  }
   0xd   :  { %s80_s10 = sshll.u32 %s919_s7, 4  ;;  %s828_s0 = smov [#allocation10]   ;;  %s81_s10 = int_to_ptr.hbm [resolvable:$true] %s80_s10 }
   0xe   :  { %58 = dma.hbm_to_vmem [thread:$0]  %s51_s25, 1024, %s53_s28, [#allocation6], %s823_s17, %s823_s17, %s824_s18  }
   0xf   :  { %s82_s11 = sshll.u32 %s828_s0, 4  ;;  %s83_s11 = int_to_ptr.vmem [resolvable:$true] %s82_s11 }
  0x10   :  { %88 = dma.hbm_to_vmem [thread:$0]  %s81_s10, 1024, %s83_s11, [#allocation9], %s823_s17, %s823_s17, %s824_s18  }
  0x11   :  { %814 = dma.done.wait [#allocation3], 128  }
  0x12   :  { %815 = vsyncadd [#allocation3], 4294967168 }
  0x13   :  { %816 = dma.done.wait [#allocation6], 2048  }
  0x14   :  { %817 = vsyncadd [#allocation6], 4294965248 }
  0x15   :  { %818 = dma.done.wait [#allocation9], 2048  }
  0x16   :  { %819 = vsyncadd [#allocation9], 4294965248  ;;  %v619_v0 = vld [vmem:[#allocation5 + $0x38] sm:$0xff]  ;;  %v618_v1 = vld [vmem:[#allocation5 + $0x30] sm:$0xff]  ;;  %s829_s16 = smov [#allocation11]   ;;  %s464_s19 = sshll.u32 %s921_s9, 4  ;;  %s465_s19 = int_to_ptr.hbm [resolvable:$true] %s464_s19 }
  0x17   :  { %187 = vmatpush.bf16.msra.mxu0 %v619_v0  ;;  %v627_v2 = vld [vmem:[#allocation7 + $0x38] sm:$0xff]  ;;  %v626_v3 = vld [vmem:[#allocation7 + $0x30] sm:$0xff]  ;;  %v617_v4 = vld [vmem:[#allocation5 + $0x28] sm:$0xff]  ;;  %s462_s17 = sshll.u32 %s829_s16, 4  ;;  %s830_s20 = smov 128   ;;  %s463_s17 = int_to_ptr.vmem [resolvable:$true] %s462_s17 }
  0x18   :  { %272 = vmatpush.bf16.msra.mxu1 %v627_v2  ;;  %v625_v5 = vld [vmem:[#allocation7 + $0x28] sm:$0xff]  ;;  %v616_v6 = vld [vmem:[#allocation5 + $0x20] sm:$0xff]  ;;  %v615_v7 = vld [vmem:[#allocation5 + $0x18] sm:$0xff]  ;;  %s831_s21 = smov 8  }
  0x19   :  { %v614_v8 = vld [vmem:[#allocation5 + $0x10] sm:$0xff]  ;;  %v613_v9 = vld [vmem:[#allocation5 + $0x8] sm:$0xff]  ;;  %v612_v10 = vld [vmem:[#allocation5] sm:$0xff] }
  0x1a   :  { %v611_v11 = vld [vmem:[#allocation2] sm:$0xff]  ;;  %v624_v12 = vld [vmem:[#allocation7 + $0x20] sm:$0xff]  ;;  %v622_v14 = vld [vmem:[#allocation7 + $0x10] sm:$0xff] }
  0x1b   :  { %188 = vmatpush.bf16.msra.mxu0 %v618_v1  ;;  %v623_v13 = vld [vmem:[#allocation7 + $0x18] sm:$0xff]  ;;  %v621_v15 = vld [vmem:[#allocation7 + $0x8] sm:$0xff]  ;;  %v620_v16 = vld [vmem:[#allocation7] sm:$0xff] }
  0x1c   :  { %273 = vmatpush.bf16.msra.mxu1 %v626_v3  ;;  %v635_v17 = vld [vmem:[#allocation8 + $0x38] sm:$0xff]  ;;  %v634_v18 = vld [vmem:[#allocation8 + $0x30] sm:$0xff]  ;;  %v633_v19 = vld [vmem:[#allocation8 + $0x28] sm:$0xff] }
  0x1d   :  { %357 = vmatpush.bf16.msra.mxu2 %v635_v17  ;;  %v654_v21 = vld [vmem:[%s914_s2] ss:$0 sm:$0xff]  ;;  %v632_v28 = vld [vmem:[#allocation8 + $0x20] sm:$0xff]  ;;  %v630_v30 = vld [vmem:[#allocation8 + $0x10] sm:$0xff] }
  0x1e   :  { %v631_v29 = vld [vmem:[#allocation8 + $0x18] sm:$0xff]  ;;  %v629_v31 = vld [vmem:[#allocation8 + $0x8] sm:$0xff]  ;;  %v628_v32 = vld [vmem:[#allocation8] sm:$0xff] }
  0x1f   :  { %189 = vmatpush.bf16.msra.mxu0 %v617_v4  ;;  %v643_v33 = vld [vmem:[#allocation10 + $0x38] sm:$0xff]  ;;  %v642_v34 = vld [vmem:[#allocation10 + $0x30] sm:$0xff]  ;;  %v641_v35 = vld [vmem:[#allocation10 + $0x28] sm:$0xff] }
  0x20   :  { %274 = vmatpush.bf16.msra.mxu1 %v625_v5  ;;  %442 = vmatpush.bf16.msra.mxu3 %v643_v33  ;;  %v655_v37 = vld [vmem:[%s916_s4] ss:$0 sm:$0xff]  ;;  %v640_v44 = vld [vmem:[#allocation10 + $0x20] sm:$0xff]  ;;  %v638_v46 = vld [vmem:[#allocation10 + $0x10] sm:$0xff] }
  0x21   :  { %358 = vmatpush.bf16.msra.mxu2 %v634_v18  ;;  %v639_v45 = vld [vmem:[#allocation10 + $0x18] sm:$0xff]  ;;  %v637_v47 = vld [vmem:[#allocation10 + $0x8] sm:$0xff]  ;;  %v636_v48 = vld [vmem:[#allocation10] sm:$0xff] }
  0x22   :  { %v656_v50 = vld [vmem:[%s918_s6] ss:$0 sm:$0xff] }
  0x23   :  { %190 = vmatpush.bf16.msra.mxu0 %v616_v6  ;;  %v657_v57 = vld [vmem:[%s920_s8] ss:$0 sm:$0xff] }
  0x24   :  { %275 = vmatpush.bf16.msra.mxu1 %v624_v12  ;;  %443 = vmatpush.bf16.msra.mxu3 %v642_v34 }
  0x25   :  { %359 = vmatpush.bf16.msra.mxu2 %v633_v19 }
  0x27   :  { %191 = vmatpush.bf16.msra.mxu0 %v615_v7 }
  0x28   :  { %276 = vmatpush.bf16.msra.mxu1 %v623_v13  ;;  %444 = vmatpush.bf16.msra.mxu3 %v641_v35 }
  0x29   :  { %360 = vmatpush.bf16.msra.mxu2 %v632_v28 }
  0x2b   :  { %192 = vmatpush.bf16.msra.mxu0 %v614_v8 }
  0x2c   :  { %277 = vmatpush.bf16.msra.mxu1 %v622_v14  ;;  %445 = vmatpush.bf16.msra.mxu3 %v640_v44 }
  0x2d   :  { %361 = vmatpush.bf16.msra.mxu2 %v631_v29 }
  0x2f   :  { %193 = vmatpush.bf16.msra.mxu0 %v613_v9 }
  0x30   :  { %278 = vmatpush.bf16.msra.mxu1 %v621_v15  ;;  %446 = vmatpush.bf16.msra.mxu3 %v639_v45 }
  0x31   :  { %362 = vmatpush.bf16.msra.mxu2 %v630_v30 }
  0x33   :  { %194 = vmatpush.bf16.msra.mxu0 %v612_v10 }
  0x34   :  { %279 = vmatpush.bf16.msra.mxu1 %v620_v16  ;;  %447 = vmatpush.bf16.msra.mxu3 %v638_v46 }
  0x35   :  { %363 = vmatpush.bf16.msra.mxu2 %v629_v31 }
  0x36   :  { %195 = vmatmul.bf16.vlgmr.msra.gmra.mxu0 %v611_v11 }
  0x38   :  { %448 = vmatpush.bf16.msra.mxu3 %v637_v47 }
  0x39   :  { %364 = vmatpush.bf16.msra.mxu2 %v628_v32 }
  0x3c   :  { %449 = vmatpush.bf16.msra.mxu3 %v636_v48 }
  0xb3   :  { %v196_v20 = vpop.f32.mrf.mxu0 }
  0xb4   :  { %v197_v22 = vadd.f32 %v654_v21, %v196_v20 }
  0xb6   :  { %658 = vtanh.f32 %v197_v22 }
  0xbb   :  { %v198_v23 = vpop.f32.mrf.mxu0 }
  0xbc   :  { %v199_v24 = vadd.f32 %v654_v21, %v198_v23  ;;  %v659_v25 = vpop.eup %658 }
  0xbe   :  { %660 = vtanh.f32 %v199_v24 }
  0xc4   :  { %v661_v26 = vpop.eup %660 }
  0xc5   :  { %v203_v27 = vpack.c.bf16 %v661_v26, %v659_v25 }
  0xc7   :  { %280 = vmatmul.bf16.vlgmr.msra.gmra.mxu1 %v203_v27 }
 0x144   :  { %v281_v36 = vpop.f32.mrf.mxu1 }
 0x145   :  { %v282_v38 = vadd.f32 %v655_v37, %v281_v36 }
 0x147   :  { %662 = vtanh.f32 %v282_v38 }
 0x14c   :  { %v283_v39 = vpop.f32.mrf.mxu1 }
 0x14d   :  { %v284_v40 = vadd.f32 %v655_v37, %v283_v39  ;;  %v663_v41 = vpop.eup %662 }
 0x14f   :  { %664 = vtanh.f32 %v284_v40 }
 0x155   :  { %v665_v42 = vpop.eup %664 }
 0x156   :  { %v288_v43 = vpack.c.bf16 %v665_v42, %v663_v41 }
 0x158   :  { %365 = vmatmul.bf16.vlgmr.msra.gmra.mxu2 %v288_v43 }
 0x1db   :  { %v366_v49 = vpop.f32.mrf.mxu2 }
 0x1dc   :  { %v367_v51 = vadd.f32 %v656_v50, %v366_v49 }
 0x1de   :  { %666 = vtanh.f32 %v367_v51 }
 0x1e3   :  { %v368_v52 = vpop.f32.mrf.mxu2 }
 0x1e4   :  { %v369_v53 = vadd.f32 %v656_v50, %v368_v52  ;;  %v667_v54 = vpop.eup %666 }
 0x1e6   :  { %668 = vtanh.f32 %v369_v53 }
 0x1ec   :  { %v669_v55 = vpop.eup %668 }
 0x1ed   :  { %v373_v56 = vpack.c.bf16 %v669_v55, %v667_v54 }
 0x1ef   :  { %450 = vmatmul.bf16.vlgmr.msra.gmra.mxu3 %v373_v56 }
 0x272   :  { %v451_v58 = vpop.f32.mrf.mxu3 }
 0x273   :  { %v452_v59 = vadd.f32 %v657_v57, %v451_v58 }
 0x275   :  { %456 = vst [vmem:[#allocation11] sm:$0xff] %v452_v59 }
 0x27a   :  { %v453_v60 = vpop.f32.mrf.mxu3 }
 0x27b   :  { %v454_v61 = vadd.f32 %v657_v57, %v453_v60 }
 0x27d   :  { %457 = vst [vmem:[#allocation11 + $0x8] sm:$0xff] %v454_v61 }
 0x27e   :  { %470 = dma.vmem_to_hbm [thread:$0]  %s463_s17, 256, %s465_s19, [#allocation4], %s830_s20, %s830_s20, %s831_s21  }
 0x27f   :  { %820 = dma.done.wait [#allocation4], 256  }
 0x280   :  { %821 = vsyncadd [#allocation4], 4294967040 }
 0x281   :  { %475 = vsyncpa [#allocation3], 1 }
 0x282   :  { %476 = vsyncpa [#allocation6], 1 }
 0x283   :  { %477 = vsyncpa [#allocation9], 1 }
 0x284   :  { %478 = vsyncpa [#allocation4], 1 }

</bundles_post_ra>
